<compile_context>
chip_gen: v6e
topology: v6e:2x2x1
jax: 0.10.0
libtpu: 0.0.40
codegen_flags: <defaults>
</compile_context>

<pallas_src>
import functools

import jax
import jax.numpy as jnp
from jax.experimental import pallas as pl
from jax.experimental.pallas import tpu as pltpu


def _round_up(n, m):
    return ((n + m - 1) // m) * m


def _affine_kernel(x_ref, w_ref, b_ref, o_ref):
    # x is streamed in its native HBM dtype; cast on-chip to the weight dtype so a bf16
    # W_eff keeps the MXU on the bf16 fast path.  Accumulation + bias add stay f32.
    x = x_ref[...].astype(w_ref.dtype)
    acc = jnp.dot(x, w_ref[...], preferred_element_type=jnp.float32)
    o_ref[...] = (acc + b_ref[...]).astype(o_ref.dtype)


def collapse_params(params, *, lane_pad=128, k_multiple=None, weight_dtype=jnp.bfloat16):
    """Fold the Linear stack into one affine map (done once at parameter-load time).

    params: list of (W, b) with W shape (in, out) == torch W.T, b shape (1, out), f32.
    Returns (w_eff, b_eff_f32, out_dim).  The output (lane) dim is zero-padded to a
    multiple of `lane_pad` (128) for lane-dense stores.  If k_multiple is set (e.g. 128),
    the contraction dim is padded with zero rows; the producer must then supply x padded
    to the same K.  W_eff is VMEM-resident in the kernel, so weight_dtype=jnp.float32 is
    essentially free bandwidth-wise if accuracy at the real 5001->3 shape demands it.
    """
    w_eff, b_eff = params[0]
    w_eff = jnp.asarray(w_eff, jnp.float32)
    b_eff = jnp.asarray(b_eff, jnp.float32).reshape(1, -1)
    for w, b in params[1:]:
        w = jnp.asarray(w, jnp.float32)
        b = jnp.asarray(b, jnp.float32).reshape(1, -1)
        w_eff = w_eff @ w
        b_eff = b_eff @ w + b
    out_dim = w_eff.shape[1]
    n_pad = _round_up(out_dim, lane_pad)
    if n_pad != out_dim:
        w_eff = jnp.pad(w_eff, ((0, 0), (0, n_pad - out_dim)))
        b_eff = jnp.pad(b_eff, ((0, 0), (0, n_pad - out_dim)))
    if k_multiple:
        k_pad = _round_up(w_eff.shape[0], k_multiple)
        if k_pad != w_eff.shape[0]:
            w_eff = jnp.pad(w_eff, ((0, k_pad - w_eff.shape[0]), (0, 0)))
    return w_eff.astype(weight_dtype), b_eff, out_dim


def _choose_tile(batch, k, n_pad, x_bytes, w_bytes, block_m):
    """Pick the batch tile (bm) and grid size under a v7x-safe VMEM budget."""
    budget = 40 * 1024 * 1024                              # double-buffered working set cap
    fixed = 2 * k * n_pad * w_bytes + 2 * n_pad * 4        # resident W_eff + bias
    per_row = 2 * k * x_bytes + 2 * n_pad * 4              # streamed x tile + out tile
    bm_cap = max(16, ((budget - fixed) // per_row) // 16 * 16)
    bm = min(block_m, bm_cap, _round_up(batch, 16))
    bm = max(16, (bm // 16) * 16)                          # sublane / bf16-packing friendly
    # Guarantee >= 2 grid steps when there is enough work: v7x has 2 TensorCores and a
    # single-step grid would leave one idle.
    if batch >= 32 and pl.cdiv(batch, bm) < 2:
        bm = _round_up(pl.cdiv(batch, 2), 16)
    grid = pl.cdiv(batch, bm)
    working_set = fixed + 2 * bm * (k * x_bytes + n_pad * 4)
    return bm, grid, working_set


@functools.partial(jax.jit,
                   static_argnames=("out_dim", "block_m", "min_pallas_rows", "out_dtype"))
def peak_height_regressor(x, w_eff, b_eff, *, out_dim, block_m=1024,
                          min_pallas_rows=256, out_dtype=jnp.float32):
    """y = x @ W_eff + b_eff  (== the full 6-layer Linear stack), shape (batch, out_dim)."""
    batch, k = x.shape
    k_w, n_pad = w_eff.shape
    assert k == k_w, "x contraction dim must match W_eff (pad x if collapse_params padded K)"

    if batch < min_pallas_rows:
        # Too little work to amortize per-call / per-grid-step overhead; same math in XLA.
        y = jnp.dot(x.astype(w_eff.dtype), w_eff, preferred_element_type=jnp.float32) + b_eff
        return y.astype(out_dtype)[:, :out_dim]

    x_bytes = x.dtype.itemsize
    w_bytes = w_eff.dtype.itemsize
    out_bytes = jnp.dtype(out_dtype).itemsize
    bm, grid, working_set = _choose_tile(batch, k, n_pad, x_bytes, w_bytes, block_m)
    # Covers v5e's 16 MiB default scoped VMEM for big tiles; never above 48 MiB (v7x has
    # only 64 MiB physical VMEM).
    vmem_limit = int(min(max(32 << 20, working_set + (8 << 20)), 48 << 20))

    cost = pl.CostEstimate(
        flops=2 * batch * k * n_pad,
        transcendentals=0,
        bytes_accessed=(batch * k * x_bytes          # x in its native HBM dtype
                        + k * n_pad * w_bytes        # W_eff (resident, read once)
                        + n_pad * 4                  # bias (f32)
                        + batch * n_pad * out_bytes),
    )

    out = pl.pallas_call(
        _affine_kernel,
        out_shape=jax.ShapeDtypeStruct((batch, n_pad), out_dtype),
        grid=(grid,),
        in_specs=[
            pl.BlockSpec((bm, k), lambda i: (i, 0)),      # activations: streamed, batch-tiled
            pl.BlockSpec((k, n_pad), lambda i: (0, 0)),   # W_eff: VMEM-resident across steps
            pl.BlockSpec((1, n_pad), lambda i: (0, 0)),   # bias: resident
        ],
        out_specs=pl.BlockSpec((bm, n_pad), lambda i: (i, 0)),
        compiler_params=pltpu.CompilerParams(
            dimension_semantics=("parallel",),
            vmem_limit_bytes=vmem_limit,
        ),
        cost_estimate=cost,
    )(x, w_eff, b_eff)

    return out[:, :out_dim]


def init_params(key, dims):
    """PyTorch nn.Linear default init: U(-1/sqrt(in), 1/sqrt(in)); W stored as (in, out)."""
    params = []
    for d_in, d_out in zip(dims[:-1], dims[1:]):
        key, kw, kb = jax.random.split(key, 3)
        bound = 1.0 / jnp.sqrt(jnp.float32(d_in))
        w = jax.random.uniform(kw, (d_in, d_out), jnp.float32, -bound, bound)
        b = jax.random.uniform(kb, (1, d_out), jnp.float32, -bound, bound)
        params.append((w, b))
    return params


def reference_forward(x, params):
    """Original 6-matmul f32 chain (matches the PyTorch module's forward)."""
    h = x
    for w, b in params:
        h = h @ w + b
    return h


if __name__ == "__main__":
    # Small shapes consistent with the module's layer chain
    # (original: 5001 -> 1024 -> 512 -> 256 -> 128 -> 64 -> 3, scaled down).
    f_signal, h1, h2, h3, h4, h5, output = 512, 256, 128, 64, 64, 32, 3
    batch = 64

    key = jax.random.PRNGKey(0)
    key, kx = jax.random.split(key)
    x = jax.random.normal(kx, (batch, f_signal), jnp.float32)
    params = init_params(key, [f_signal, h1, h2, h3, h4, h5, output])

    # One-time parameter collapse: with no nonlinearities the whole net is one affine map.
    # TODO(synk): at the real K=5001 shape, pass k_multiple=128 (and pad x to 5120 at the
    # producer) and validate whether weight_dtype=jnp.float32 is needed for accuracy.
    w_eff, b_eff, out_dim = collapse_params(params)

    # Force the Pallas path for the demo (default min_pallas_rows gates tiny batches to XLA).
    out = peak_height_regressor(x, w_eff, b_eff, out_dim=out_dim, min_pallas_rows=1)
    out = jax.block_until_ready(out)
    assert out.shape == (batch, output)

    # Strict check: same bf16-weight / f32-accumulate math done in plain XLA.
    x_bf = x.astype(jnp.bfloat16).astype(jnp.float32)
    ref_same = (x_bf @ w_eff.astype(jnp.float32) + b_eff)[:, :out_dim]
    assert jnp.allclose(out, ref_same, atol=2e-4, rtol=1e-3), (
        f"max abs err vs same-precision ref {jnp.max(jnp.abs(out - ref_same))}")

    # Semantics check: full-precision 6-layer chain (tolerance covers the bf16 cast).
    ref_chain = reference_forward(x, params)
    assert jnp.allclose(out, ref_chain, atol=5e-3, rtol=5e-2), (
        f"max abs err vs f32 6-layer chain {jnp.max(jnp.abs(out - ref_chain))}")

    # The small-batch XLA fallback (default gate) must agree with the Pallas path.
    out_gated = jax.block_until_ready(
        peak_height_regressor(x, w_eff, b_eff, out_dim=out_dim))
    assert jnp.allclose(out, out_gated, atol=1e-3, rtol=1e-3), (
        f"max abs err Pallas vs gated-XLA path {jnp.max(jnp.abs(out - out_gated))}")

    print("KERNEL_OK")
</pallas_src>

<mosaic_0001>
module attributes {stable_mosaic.version = 11 : i64} {
  func.func @_affine_kernel(%arg0: i32, %arg1: memref<32x512xf32, #tpu.memory_space<vmem>>, %arg2: memref<512x128xbf16, #tpu.memory_space<vmem>>, %arg3: memref<1x128xf32, #tpu.memory_space<vmem>>, %arg4: memref<32x128xf32, #tpu.memory_space<vmem>>) attributes {dimension_semantics = [#tpu.dimension_semantics<parallel>], iteration_bounds = array<i64: 2>, scalar_prefetch = 0 : i64, scratch_operands = 0 : i64, tpu.core_type = #tpu.core_type<tc>, window_params = [{transform_indices = @transform_0, window_bounds = array<i64: 32, 512>}, {pipeline_mode = #tpu.pipeline_mode<synchronous>, transform_indices = @transform_1, window_bounds = array<i64: 512, 128>}, {pipeline_mode = #tpu.pipeline_mode<synchronous>, transform_indices = @transform_2, window_bounds = array<i64: 1, 128>}, {transform_indices = @transform_3, window_bounds = array<i64: 32, 128>}]} {
    %c0 = arith.constant 0 : index
    %c0_0 = arith.constant 0 : index
    %0 = vector.load %arg1[%c0, %c0_0] : memref<32x512xf32, #tpu.memory_space<vmem>>, vector<32x512xf32>
    %1 = arith.truncf %0 : vector<32x512xf32> to vector<32x512xbf16>
    %c0_1 = arith.constant 0 : index
    %c0_2 = arith.constant 0 : index
    %2 = vector.load %arg2[%c0_1, %c0_2] : memref<512x128xbf16, #tpu.memory_space<vmem>>, vector<512x128xbf16>
    %cst = arith.constant dense<0.000000e+00> : vector<32x128xf32>
    %3 = tpu.matmul %1, %2, %cst {dimension_numbers = #tpu.dot_dimension_numbers<[1], [0], [0], [1], [0, 0, 1, 1], [], []>} : vector<32x512xbf16>, vector<512x128xbf16>, vector<32x128xf32> -> vector<32x128xf32>
    %c0_3 = arith.constant 0 : index
    %c0_4 = arith.constant 0 : index
    %4 = vector.load %arg3[%c0_3, %c0_4] : memref<1x128xf32, #tpu.memory_space<vmem>>, vector<1x128xf32>
    %5 = vector.broadcast %4 : vector<1x128xf32> to vector<32x128xf32>
    %6 = arith.addf %3, %5 : vector<32x128xf32>
    %c0_5 = arith.constant 0 : index
    %c0_6 = arith.constant 0 : index
    %7 = vector.load %arg4[%c0_5, %c0_6] : memref<32x128xf32, #tpu.memory_space<vmem>>, vector<32x128xf32>
    tpu.vector_store %arg4[%c0_5, %c0_6], %6 {strides = array<i32>} : memref<32x128xf32, #tpu.memory_space<vmem>>, vector<32x128xf32>,
    return
  }
  func.func @transform_0(%arg0: i32) -> (i32, i32) {
    %c0_i32 = arith.constant 0 : i32
    %c0_i32_0 = arith.constant 0 : i32
    return %arg0, %c0_i32 : i32, i32
  }
  func.func @transform_1(%arg0: i32) -> (i32, i32) {
    %c0_i32 = arith.constant 0 : i32
    %c0_i32_0 = arith.constant 0 : i32
    %c0_i32_1 = arith.constant 0 : i32
    return %c0_i32, %c0_i32_0 : i32, i32
  }
  func.func @transform_2(%arg0: i32) -> (i32, i32) {
    %c0_i32 = arith.constant 0 : i32
    %c0_i32_0 = arith.constant 0 : i32
    %c0_i32_1 = arith.constant 0 : i32
    return %c0_i32, %c0_i32_0 : i32, i32
  }
  func.func @transform_3(%arg0: i32) -> (i32, i32) {
    %c0_i32 = arith.constant 0 : i32
    %c0_i32_0 = arith.constant 0 : i32
    return %arg0, %c0_i32 : i32, i32
  }
}

</mosaic_0001>

<bundles_post_ra>
// kernel: peak_height_regressor.1
= control target key start
LH: loop header
LB: loop body
LE: loop exit
PB: predicated region body
PF: predicated region fallthrough
CT: control target
= control target key end

     0   :  { %8 = vsyncpa [#allocation3], 0  ;;  %s1139_s0 = inlined_call_operand.hbm [shape: f32[64,512], index: 0, kind: input, shape index: {}]   ;;  %s1140_s1 = inlined_call_operand.hbm [shape: bf16[512,128], index: 1, kind: input, shape index: {}]   ;;  %s1141_s2 = inlined_call_operand.vmem [shape: f32[1,128], index: 2, kind: input, shape index: {}]   ;;  %s1142_s3 = inlined_call_operand.vmem [shape: f32[64,128], index: 3, kind: output, shape index: {}]  }
   0x1   :  { %10 = vsyncpa [#allocation3 + $0x1], 0 }
   0x2   :  { %11 = vsyncpa [#allocation5], 0  ;;  %s989_s12 = smov 0   ;;  %s991_s13 = smov 0  }
   0x3   :  { %s993_s14 = smov 0   ;;  %s995_s15 = smov 0  }
   0x4 LB: > { %s676_s16 = sadd.s32 4294967295, %s961_s15   ;;  %p37_p0 = scmp.ne.s32.totalorder %s953_s13, %s949_s12  ;;  %s961_s15 = sphi %s995_s15, %s1158_s15   ;;  %s957_s14 = sphi %s993_s14, %s1157_s14   ;;  %s953_s13 = sphi %s991_s13, %s1156_s13   ;;  %s949_s12 = sphi %s989_s12, %s1155_s12  }
   0x5   : > { %p1011_p1 = scmp.eq.s32.totalorder %s676_s16, 0  ;;  %p678_p2 = scmp.ge.s32.totalorder %s961_s15, 1 }
   0x6   : > { %p116_p3 = scmp.lt.s32.totalorder %s961_s15, 3  ;;  %s963_s20 = smov [#allocation4]  }
   0x7   : > { %s1147_s17 = scalar_select %p1011_p1, 1, 0 }
   0x8   : > { %p1019_p4 = por %p1011_p1, %p37_p0  ;;  %p1023_p5 = pnand %p678_p2, %p116_p3 }
   0x9   : > { %s128_s21 = sshll.u32 %s963_s20, 4  ;;  %s1036_s23 = sadd.s32 1, %s961_s15   ;;  %s129_s21 = int_to_ptr.vmem [resolvable:$true] %s128_s21 }
   0xa   : > { %s1148_s18 = scalar_select %p1019_p4, 1, 0 }
   0xb   : > { %s1149_s19 = scalar_select %p1023_p5, 1, 0 }
   0xc   : > { %p789_p6 = pneg %p1023_p5  ;;  %s24_s24 = sadd.s32 1, %s957_s14 }
   0xd   : > { %s21_s25 = ssub.s32 %s961_s15, %s1036_s23  ;;  %s880_s26 = scalar_lea.vmem %s129_s21, 4096 }
   0xe   : > { %p1031_p7 = pnand %p789_p6, %p1011_p1  ;;  %p881_p9 = scmp.ne.s32.totalorder %s129_s21, %s880_s26 }
   0xf   : > { %p888_p12 = scmp.lt.s32.totalorder %s129_s21, %s129_s21  ;;  %p889_p13 = scmp.lt.s32.totalorder %s880_s26, %s880_s26 }
  0x10   : > { %p871_p8 = pneg %p1031_p7 }
  0x11   : > { %p890_p0 = por %p889_p13, %p888_p12 }
  0x12   : > { %p883_p10 = pnand %p881_p9, %p871_p8 }
  0x14   : > { %p884_p11 = pneg %p883_p10 }
  0x16   : > { %p891_p2 = pnand %p890_p0, %p884_p11 }
  0x18   : > { %894 = shalt.err (!%p891_p2)
}
  0x19   : > { %s964_s27 = smov 64   ;;  %s965_s28 = smov 4  }
  0x1a   : > { %792 = dma.hbm_to_vmem [thread:$0]  (!%p1031_p7), %s1140_s1, 4096, %s129_s21, [#allocation5], %s964_s27, %s964_s27, %s965_s28  }
  0x1b   : > { %p22_p3 = scmp.eq.s32.totalorder %s21_s25, 0  ;;  %p31_p6 = scmp.ne.s32.totalorder %s957_s14, %s953_s13 }
  0x1c   : > { %p32_p8 = scmp.eq.s32.totalorder %s961_s15, 0  ;;  %p798_p9 = scmp.lt.s32.totalorder %s961_s15, 2 }
  0x1d   : > { %s1053_s4 = scalar_select %p22_p3, %s957_s14, %s24_s24  }
  0x1e   : > { %p33_p10 = por %p32_p8, %p31_p6  ;;  %s145_s5 = sand.u32 1, %s957_s14  }
  0x1f   : > { %s681_s6 = sshll.u32 %s145_s5, 7  ;;  %s726_s7 = sshll.u32 %s961_s15, 11 }
  0x20   : > { %s1060_s10 = scalar_lea.hbm %s1139_s0, %s726_s7  ;;  %s149_s11 = scalar_lea.vmem [#allocation2], %s681_s6 }
  0x21   : > { %s157_s12 = sshll.u32 %s149_s11, 4  ;;  %p1064_p7 = pnand %p798_p9, %p33_p10  ;;  %s1062_s12 = int_to_ptr.vmem [resolvable:$true] %s157_s12 }
  0x22   : > { %s1068_s21 = scalar_lea.sflag [#allocation3], %s145_s5  ;;  %s895_s22 = scalar_lea.hbm %s1060_s10, 2048 }
  0x23   : > { %p896_p11 = scmp.ne.s32.totalorder %s1060_s10, %s895_s22  ;;  %p897_p12 = pneg %p1064_p7 }
  0x24   : > { %s900_s26 = scalar_lea.hbm %s1139_s0, 4096  ;;  %p901_p2 = scmp.lt.s32.totalorder %s1060_s10, %s1139_s0 }
  0x25   : > { %p898_p13 = pnand %p897_p12, %p896_p11  ;;  %p902_p3 = scmp.lt.s32.totalorder %s900_s26, %s895_s22 }
  0x27   : > { %p899_p0 = pneg %p898_p13  ;;  %p903_p6 = por %p902_p3, %p901_p2 }
  0x29   : > { %p904_p8 = pnand %p903_p6, %p899_p0 }
  0x2b   : > { %907 = shalt.err (!%p904_p8)
}
  0x2c   : > { %s908_s29 = scalar_lea.vmem %s1062_s12, 2048  ;;  %s966_s30 = smov [#allocation2]  }
  0x2d   : > { %p909_p9 = scmp.ne.s32.totalorder %s1062_s12, %s908_s29  ;;  %s913_s5 = sshll.u32 %s966_s30, 4  ;;  %s914_s5 = int_to_ptr.vmem [resolvable:$false] %s913_s5 }
  0x2e   : > { %s915_s6 = scalar_lea.vmem %s914_s5, 4096  ;;  %p916_p13 = scmp.lt.s32.totalorder %s1062_s12, %s914_s5 }
  0x2f   : > { %p911_p10 = pnand %p909_p9, %p897_p12  ;;  %p917_p1 = scmp.lt.s32.totalorder %s915_s6, %s908_s29 }
  0x31   : > { %p912_p11 = pneg %p911_p10  ;;  %p918_p4 = por %p917_p1, %p916_p13 }
  0x33   : > { %p919_p5 = pnand %p918_p4, %p912_p11 }
  0x35   : > { %922 = shalt.err (!%p919_p5)
}
  0x36   : > { %s967_s7 = smov 512   ;;  %s968_s8 = smov 32  }
  0x37   : > { %796 = dma.hbm_to_vmem [thread:$0]  (!%p1064_p7), %s1060_s10, 2048, %s1062_s12, %s1068_s21, %s967_s7, %s967_s7, %s968_s8  }
  0x38   : > { %p1152_p12 = scmp.ne.s32.totalorder %s1149_s19, 0 }
  0x39   : > { %s171_s9 = sand.u32 (!%p1152_p12), 1, %s953_s13   ;;  %p1153_p1 = scmp.ne.s32.totalorder (!%p1152_p12), %s1148_s18, 0 }
  0x3a   : > { %169 = sbr.rel (%p1152_p12) target bundleno = 315 (0x13b), region = 32  ;;  %s686_s11 = sshll.u32 (!%p1152_p12), %s171_s9, 7 }
  0x3b   : > { %s172_s22 = scalar_lea.sflag (!%p1152_p12), [#allocation3], %s171_s9  ;;  %s1092_s24 = scalar_lea.vmem (!%p1152_p12), [#allocation2], %s686_s11 }
  0x3f   : > { %940 = dma.done.wait (%p1153_p1), %s172_s22, 2048  }
  0x40   : > { %942 = vsyncadd (%p1153_p1), %s172_s22, 4294965248  ;;  %p1154_p4 = scmp.ne.s32.totalorder %s1147_s17, 0 }
  0x42   : > { %944 = dma.done.wait (%p1154_p4), [#allocation5], 4096  }
  0x43   : > { %946 = vsyncadd (%p1154_p4), [#allocation5], 4294963200  ;;  %v837_v0 = vld [vmem:[#allocation4 + $0x78] sm:$0xff]   ;;  %v841_v4 = vld [vmem:[#allocation4 + $0x70] sm:$0xff]   ;;  %s688_s17 = sshll.u32 %s676_s16, 2 }
  0x44   : > { %v838_v1 = vld [vmem:[#allocation4 + $0xf8] sm:$0xff]   ;;  %727 = vmatprep.subr.bf16.mxu0 %v837_v0  ;;  %v842_v5 = vld [vmem:[#allocation4 + $0xf0] sm:$0xff]   ;;  %v845_v8 = vld [vmem:[#allocation4 + $0x68] sm:$0xff]   ;;  %p204_p5 = scmp.lt.s32.totalorder %s688_s17, 7 }
  0x45   : > { %v839_v2 = vld [vmem:[#allocation4 + $0x38] sm:$0xff]   ;;  %755 = vmatprep.subr.bf16.mxu1 %v838_v1  ;;  %v843_v6 = vld [vmem:[#allocation4 + $0x30] sm:$0xff]   ;;  %v846_v9 = vld [vmem:[#allocation4 + $0xe8] sm:$0xff]  }
  0x46   : > { %v840_v3 = vld [vmem:[#allocation4 + $0xb8] sm:$0xff]   ;;  %728 = vmatpush3.bf16.msra.mxu0 %v839_v2  ;;  %v844_v7 = vld [vmem:[#allocation4 + $0xb0] sm:$0xff]   ;;  %v847_v10 = vld [vmem:[#allocation4 + $0x28] sm:$0xff]   ;;  %s1160_s17 = smov (!%p204_p5, %s688_s17), 7 }
  0x47   : > { %756 = vmatpush3.bf16.msra.mxu1 %v840_v3  ;;  %729 = vmatprep.subr.bf16.mxu0 %v841_v4  ;;  %v848_v11 = vld [vmem:[#allocation4 + $0xa8] sm:$0xff]   ;;  %v849_v12 = vld [vmem:[#allocation4 + $0x60] sm:$0xff]   ;;  %v853_v16 = vld [vmem:[#allocation4 + $0x58] sm:$0xff]   ;;  %s689_s10 = sshll.u32 %s1160_s17, 3 }
  0x48   : > { %757 = vmatprep.subr.bf16.mxu1 %v842_v5  ;;  %v850_v13 = vld [vmem:[#allocation4 + $0xe0] sm:$0xff]   ;;  %v854_v17 = vld [vmem:[#allocation4 + $0xd8] sm:$0xff]   ;;  %v857_v20 = vld [vmem:[#allocation4 + $0x50] sm:$0xff]   ;;  %s207_s15 = scalar_lea.vmem %s1142_s3, %s689_s10 }
  0x49   : > { %v851_v14 = vld [vmem:[#allocation4 + $0x20] sm:$0xff]   ;;  %v855_v18 = vld [vmem:[#allocation4 + $0x18] sm:$0xff]   ;;  %v858_v21 = vld [vmem:[#allocation4 + $0xd0] sm:$0xff]  }
  0x4a   : > { %730 = vmatpush3.bf16.msra.mxu0 %v843_v6  ;;  %v852_v15 = vld [vmem:[#allocation4 + $0xa0] sm:$0xff]   ;;  %v856_v19 = vld [vmem:[#allocation4 + $0x98] sm:$0xff]   ;;  %v859_v22 = vld [vmem:[#allocation4 + $0x10] sm:$0xff]  }
  0x4b   : > { %758 = vmatpush3.bf16.msra.mxu1 %v844_v7  ;;  %731 = vmatprep.subr.bf16.mxu0 %v845_v8  ;;  %v860_v23 = vld [vmem:[#allocation4 + $0x90] sm:$0xff]   ;;  %v861_v24 = vld [vmem:[#allocation4 + $0x48] sm:$0xff]   ;;  %v865_v28 = vld [vmem:[#allocation4 + $0x40] sm:$0xff]  }
  0x4c   : > { %759 = vmatprep.subr.bf16.mxu1 %v846_v9  ;;  %v862_v25 = vld [vmem:[#allocation4 + $0xc8] sm:$0xff]   ;;  %v866_v29 = vld [vmem:[#allocation4 + $0xc0] sm:$0xff]   ;;  %v213_v34 = vld [vmem:[%s1092_s24 + $0x18] sm:$0xff] }
  0x4d   : > { %v863_v26 = vld [vmem:[#allocation4 + $0x8] sm:$0xff]   ;;  %v867_v30 = vld [vmem:[#allocation4] sm:$0xff]   ;;  %v217_v36 = vld [vmem:[%s1092_s24 + $0x38] sm:$0xff] }
  0x4e   : > { %732 = vmatpush3.bf16.msra.mxu0 %v847_v10  ;;  %v864_v27 = vld [vmem:[#allocation4 + $0x88] sm:$0xff]   ;;  %v868_v31 = vld [vmem:[#allocation4 + $0x80] sm:$0xff]   ;;  %v229_v39 = vpack.c.bf16 %v217_v36, %v213_v34  ;;  %v212_v41 = vld [vmem:[%s1092_s24 + $0x10] sm:$0xff] }
  0x4f   : > { %760 = vmatpush3.bf16.msra.mxu1 %v848_v11  ;;  %733 = vmatprep.subr.bf16.mxu0 %v849_v12  ;;  %v211_v32 = vld [vmem:[%s1092_s24 + $0x8] sm:$0xff]  ;;  %v210_v37 = vld [vmem:[%s1092_s24] sm:$0xff]  ;;  %v216_v42 = vld [vmem:[%s1092_s24 + $0x30] sm:$0xff] }
  0x50   : > { %761 = vmatprep.subr.bf16.mxu1 %v850_v13  ;;  %v215_v33 = vld [vmem:[%s1092_s24 + $0x28] sm:$0xff]  ;;  %v214_v38 = vld [vmem:[%s1092_s24 + $0x20] sm:$0xff]  ;;  %v228_v44 = vpack.c.bf16 %v216_v42, %v212_v41  ;;  %v221_v46 = vld [vmem:[%s1092_s24 + $0x58] sm:$0xff]  ;;  %578 = vmatprep.mubr.bf16.mxu1 %v229_v39 }
  0x51   : > { %v227_v35 = vpack.c.bf16 %v215_v33, %v211_v32  ;;  %v226_v40 = vpack.c.bf16 %v214_v38, %v210_v37  ;;  %v219_v43 = vld [vmem:[%s1092_s24 + $0x48] sm:$0xff]  ;;  %v225_v47 = vld [vmem:[%s1092_s24 + $0x78] sm:$0xff]  ;;  %v218_v50 = vld [vmem:[%s1092_s24 + $0x40] sm:$0xff] }
  0x52   : > { %734 = vmatpush3.bf16.msra.mxu0 %v851_v14  ;;  %v223_v45 = vld [vmem:[%s1092_s24 + $0x68] sm:$0xff]  ;;  %v233_v49 = vpack.c.bf16 %v225_v47, %v221_v46  ;;  %v222_v51 = vld [vmem:[%s1092_s24 + $0x60] sm:$0xff]  ;;  %v220_v52 = vld [vmem:[%s1092_s24 + $0x50] sm:$0xff] }
  0x53   : > { %762 = vmatpush3.bf16.msra.mxu1 %v852_v15  ;;  %735 = vmatprep.subr.bf16.mxu0 %v853_v16  ;;  %v231_v48 = vpack.c.bf16 %v223_v45, %v219_v43  ;;  %v224_v53 = vld [vmem:[%s1092_s24 + $0x70] sm:$0xff]  ;;  %v230_v54 = vpack.c.bf16 %v222_v51, %v218_v50  ;;  %v690_v58 = vld [vmem:[%s1141_s2] ss:$0 sm:$0xff] }
  0x54   : > { %763 = vmatprep.subr.bf16.mxu1 %v854_v17  ;;  %529 = vmatprep.mubr.bf16.mxu0 %v227_v35  ;;  %v232_v55 = vpack.c.bf16 %v224_v53, %v220_v52 }
  0x56   : > { %736 = vmatpush3.bf16.msra.mxu0 %v855_v18 }
  0x57   : > { %764 = vmatpush3.bf16.msra.mxu1 %v856_v19  ;;  %737 = vmatprep.subr.bf16.mxu0 %v857_v20 }
  0x58   : > { %765 = vmatprep.subr.bf16.mxu1 %v858_v21 }
  0x5a   : > { %738 = vmatpush3.bf16.msra.mxu0 %v859_v22 }
  0x5b   : > { %766 = vmatpush3.bf16.msra.mxu1 %v860_v23  ;;  %739 = vmatprep.subr.bf16.mxu0 %v861_v24 }
  0x5c   : > { %767 = vmatprep.subr.bf16.mxu1 %v862_v25 }
  0x5e   : > { %740 = vmatpush3.bf16.msra.mxu0 %v863_v26 }
  0x5f   : > { %768 = vmatpush3.bf16.msra.mxu1 %v864_v27  ;;  %741 = vmatprep.subr.bf16.mxu0 %v865_v28 }
  0x60   : > { %769 = vmatprep.subr.bf16.mxu1 %v866_v29 }
  0x62   : > { %742 = vmatpush3.bf16.msra.mxu0 %v867_v30 }
  0x63   : > { %770 = vmatpush3.bf16.msra.mxu1 %v868_v31 }
  0x65   : > { %530 = vmatmul.mubr.bf16.vlgmr.msra.gmra.mxu0 %v226_v40 }
  0x66   : > { %579 = vmatmul.mubr.bf16.vlgmr.msra.gmra.mxu1 %v228_v44  ;;  %537 = vmatprep.mubr.bf16.mxu0 %v231_v48 }
  0x67   : > { %586 = vmatprep.mubr.bf16.mxu1 %v233_v49 }
  0x6d   : > { %538 = vmatmul.mubr.bf16.gmra.mxu0 %v230_v54 }
  0x6e   : > { %587 = vmatmul.mubr.bf16.gmra.mxu1 %v232_v55 }
 0x125   : > { %v743_v56 = vpop.f32.mrf.mxu0 }
 0x126   : > { %v771_v57 = vpop.f32.mrf.mxu1 }
 0x127   : > { %v744_v59 = vpop.f32.mrf.mxu0 }
 0x128   : > { %v745_v60 = vadd.f32 %v744_v59, %v743_v56  ;;  %v772_v61 = vpop.f32.mrf.mxu1 }
 0x129   : > { %v746_v62 = vpop.f32.mrf.mxu0  ;;  %v773_v0 = vadd.f32 %v772_v61, %v771_v57 }
 0x12a   : > { %v532_v63 = vadd.f32 %v745_v60, %v690_v58  ;;  %v774_v1 = vpop.f32.mrf.mxu1 }
 0x12b   : > { %v747_v2 = vpop.f32.mrf.mxu0 }
 0x12c   : > { %v581_v3 = vadd.f32 %v773_v0, %v532_v63  ;;  %v748_v4 = vadd.f32 %v747_v2, %v746_v62  ;;  %v775_v5 = vpop.f32.mrf.mxu1 }
 0x12d   : > { %v749_v6 = vpop.f32.mrf.mxu0  ;;  %v776_v8 = vadd.f32 %v775_v5, %v774_v1 }
 0x12e   : > { %595 = vst [vmem:[%s207_s15] sm:$0xff] %v581_v3  ;;  %v535_v7 = vadd.f32 %v748_v4, %v690_v58  ;;  %v777_v9 = vpop.f32.mrf.mxu1 }
 0x12f   : > { %v750_v10 = vpop.f32.mrf.mxu0 }
 0x130   : > { %v584_v11 = vadd.f32 %v776_v8, %v535_v7  ;;  %v751_v12 = vadd.f32 %v750_v10, %v749_v6  ;;  %v778_v13 = vpop.f32.mrf.mxu1 }
 0x131   : > { %v752_v14 = vpop.f32.mrf.mxu0  ;;  %v779_v16 = vadd.f32 %v778_v13, %v777_v9 }
 0x132   : > { %596 = vst [vmem:[%s207_s15 + $0x8] sm:$0xff] %v584_v11  ;;  %v540_v15 = vadd.f32 %v751_v12, %v690_v58  ;;  %v780_v17 = vpop.f32.mrf.mxu1 }
 0x133   : > { %v753_v18 = vpop.f32.mrf.mxu0 }
 0x134   : > { %v589_v19 = vadd.f32 %v779_v16, %v540_v15  ;;  %v754_v20 = vadd.f32 %v753_v18, %v752_v14  ;;  %v781_v21 = vpop.f32.mrf.mxu1 }
 0x135   : > { %v782_v23 = vadd.f32 %v781_v21, %v780_v17 }
 0x136   : > { %597 = vst [vmem:[%s207_s15 + $0x10] sm:$0xff] %v589_v19  ;;  %v543_v22 = vadd.f32 %v754_v20, %v690_v58 }
 0x138   : > { %v592_v24 = vadd.f32 %v782_v23, %v543_v22 }
 0x13a   : > { %598 = vst [vmem:[%s207_s15 + $0x18] sm:$0xff] %v592_v24 }
 0x13b PF: > { %p14_p7 = scmp.ge.s32.totalorder %s1036_s23, 4   ;;  %s1155_s12 = smov %s953_s13 }
 0x13c   : > { %s1156_s13 = smov %s957_s14  ;;  %s1157_s14 = smov %s1053_s4 }
 0x13d   : > { %s1158_s15 = smov %s1036_s23  ;;  %16 = sbr.rel (!%p14_p7) target bundleno = 4 (0x4), region = 76 }
 0x142   :  { %621 = vsyncpa [#allocation3], 1 }
 0x143   :  { %623 = vsyncpa [#allocation3 + $0x1], 1 }
 0x144   :  { %624 = vsyncpa [#allocation5], 1 }

</bundles_post_ra>
